<compile_context>
chip_gen: v7x
topology: tpu7x:2x2x1
jax: 0.10.0
libtpu: 0.0.40
codegen_flags: <defaults>
</compile_context>

<pallas_src>
import jax
import jax.numpy as jnp
from jax.experimental import pallas as pl
from jax.experimental.pallas import tpu as pltpu


# ---------------------------------------------------------------------------
# Kernel
# ---------------------------------------------------------------------------
def _resblock_kernel(x_ref, w1_ref, b1_ref, w2_ref, b2_ref, o_ref):
    """One B_t-image tile per grid step, folded lane-dense (B_t, H, W*C) layout.

    x_ref  : (B_t, H, WC)  f32 input tile, WC = W*C on the lane axis
    w1_ref : (3, WC, WC)   conv1 banded weight, one (WC, WC) slab per kh tap
    b1_ref : (1, WC)       conv1 bias tiled over W (f32)
    w2_ref : (3, WC, WC)   conv2 banded weight
    b2_ref : (1, WC)       conv2 bias (f32)
    o_ref  : (B_t, H, WC)  f32 output tile
    """
    bt, h, wc = o_ref.shape
    m = bt * h
    mm_dtype = w1_ref.dtype

    x = x_ref[...]                                   # (B_t, H, WC) f32 (residual)

    def conv3x3(v, w_ref, b_ref):
        # v: (B_t, H, WC) in the matmul dtype.  The W taps + W-boundary zero
        # padding live in the banded weights; the H taps are three row-shifted
        # views of v with a zero halo row per image (sublane-only work, no HBM).
        zero_row = jnp.zeros((bt, 1, wc), v.dtype)
        taps = (
            jnp.concatenate([zero_row, v[:, : h - 1, :]], axis=1),  # kh=0: row h-1
            v,                                                       # kh=1: row h
            jnp.concatenate([v[:, 1:, :], zero_row], axis=1),        # kh=2: row h+1
        )
        # Three MXU matmuls, f32 accumulation (batch folded into M = B_t*H).
        acc = jnp.dot(taps[0].reshape(m, wc), w_ref[0],
                      preferred_element_type=jnp.float32)
        for kh in (1, 2):
            acc = acc + jnp.dot(taps[kh].reshape(m, wc), w_ref[kh],
                                preferred_element_type=jnp.float32)
        return acc + b_ref[...]                      # (M, WC) f32

    a1 = jnp.maximum(conv3x3(x.astype(mm_dtype), w1_ref, b1_ref), 0.0)
    a2 = conv3x3(a1.astype(mm_dtype).reshape(bt, h, wc), w2_ref, b2_ref)
    o_ref[...] = (x + a2.reshape(bt, h, wc)).astype(o_ref.dtype)


# ---------------------------------------------------------------------------
# Host-side helpers
# ---------------------------------------------------------------------------
def _banded_conv_weights(w_oihw, W, dtype):
    """Fold the 3 width-taps + W-boundary zero padding of a 3x3 conv (padding=1)
    into three banded matmul slabs of shape (W*C, W*C), one per kh tap."""
    C = w_oihw.shape[0]
    k = jnp.transpose(w_oihw, (2, 3, 1, 0)).astype(jnp.float32)        # (kh, kw, ci, co)
    # delta[kw, wi, w] = 1 iff wi == w + kw - 1 (out-of-range -> zero padding)
    delta = (jnp.arange(W)[None, :, None] ==
             (jnp.arange(W)[None, None, :] + jnp.arange(3)[:, None, None] - 1)
             ).astype(jnp.float32)                                      # (kw, wi, w)
    m = jnp.einsum("xiw,hxco->hicwo", delta, k)                         # (3, W, C, W, C)
    return m.reshape(3, W * C, W * C).astype(dtype)


def _pick_batch_tile(n, h, *, target_m=256, min_grid_steps=2):
    """Largest divisor B_t of n with B_t*h <= target_m matmul rows, preferring
    to keep >= min_grid_steps grid steps so the input/output pipeline stays fed.
    TODO(synk): on v7x pass min_grid_steps=4 (2 TensorCores x 2 steps each)."""
    divisors = [d for d in range(1, n + 1) if n % d == 0]
    fitting = [d for d in divisors if d * h <= target_m] or [1]
    multi = [d for d in fitting if n // d >= min_grid_steps]
    return max(multi) if multi else max(fitting)


def resblock_pallas_nhwc(x_nhwc, w1, b1, w2, b2, *,
                         matmul_dtype=jnp.bfloat16,
                         batch_tile=None,
                         single_buffer_weights=False):
    """NHWC-native entry point (preferred: no layout transposes around the kernel).

    x_nhwc: (N, H, W, C); w*: (C, C, 3, 3) OIHW; b*: (C,).  Returns NHWC.
    matmul_dtype=jnp.bfloat16 (default) keeps f32 accumulation but feeds the MXU
    bf16 operands; use jnp.float32 for closer parity with the PyTorch f32 module.
    """
    N, H, W, C = x_nhwc.shape
    WC = W * C
    # Lane-dense requirement: unmasked full-lane stores and cheap sublane shifts
    # only hold when WC lands exactly on 128-lane tiles and H on sublane tiles.
    # TODO(synk): pad W*C up to a multiple of 128 (and mask) instead of asserting.
    assert WC % 128 == 0, f"W*C={WC} must be a multiple of 128 (lane tile)"
    assert H % 8 == 0, f"H={H} must be a multiple of 8 (16 preferred for bf16)"

    bt = batch_tile if batch_tile is not None else _pick_batch_tile(N, H)
    assert N % bt == 0, f"batch_tile={bt} must divide N={N}"
    grid = (N // bt,)

    x = x_nhwc.reshape(N, H, WC)                       # free reshape, lane axis = W*C
    w1b = _banded_conv_weights(w1, W, matmul_dtype)    # (3, WC, WC)
    w2b = _banded_conv_weights(w2, W, matmul_dtype)
    b1r = jnp.tile(b1.astype(jnp.float32), W).reshape(1, WC)
    b2r = jnp.tile(b2.astype(jnp.float32), W).reshape(1, WC)

    # Grid-invariant operands: single-buffer them on v7x / large WC to halve
    # their VMEM footprint (Pallas double-buffers every input by default).
    w_spec_kwargs = dict(pipeline_mode=pl.Buffered(1)) if single_buffer_weights else {}

    itemsize = jnp.dtype(matmul_dtype).itemsize
    block_bytes = bt * H * WC * 4                      # one f32 activation block
    weight_bytes = 2 * 3 * WC * WC * itemsize          # both banded weights
    weight_copies = 1 if single_buffer_weights else 2
    vmem_need = 2 * 2 * block_bytes + weight_copies * weight_bytes + 4 * WC * 4
    vmem_limit = int(min(64 * 2 ** 20, max(16 * 2 ** 20, 4 * vmem_need)))

    cost = pl.CostEstimate(
        flops=2 * 2 * (N * H) * (3 * WC) * WC,         # 2 convs, 2*M*K*N each
        transcendentals=0,
        bytes_accessed=int(2 * N * H * WC * 4 + weight_bytes + 2 * WC * 4),
    )

    out = pl.pallas_call(
        _resblock_kernel,
        out_shape=jax.ShapeDtypeStruct((N, H, WC), x.dtype),
        grid_spec=pltpu.PrefetchScalarGridSpec(
            num_scalar_prefetch=0,
            grid=grid,
            in_specs=[
                pl.BlockSpec((bt, H, WC), lambda n: (n, 0, 0)),
                pl.BlockSpec((3, WC, WC), lambda n: (0, 0, 0), **w_spec_kwargs),
                pl.BlockSpec((1, WC), lambda n: (0, 0)),
                pl.BlockSpec((3, WC, WC), lambda n: (0, 0, 0), **w_spec_kwargs),
                pl.BlockSpec((1, WC), lambda n: (0, 0)),
            ],
            out_specs=pl.BlockSpec((bt, H, WC), lambda n: (n, 0, 0)),
        ),
        compiler_params=pltpu.CompilerParams(
            dimension_semantics=("parallel",),
            vmem_limit_bytes=vmem_limit),
        cost_estimate=cost,
    )(x, w1b, b1r, w2b, b2r)

    return out.reshape(N, H, W, C)


def resblock_pallas(x_nchw, w1, b1, w2, b2, **kwargs):
    """NCHW wrapper for PyTorch-interface parity.  Each transpose is a full extra
    HBM pass over the activations; keep the surrounding model NHWC and call
    resblock_pallas_nhwc directly to avoid it."""
    x = jnp.transpose(x_nchw, (0, 2, 3, 1))
    y = resblock_pallas_nhwc(x, w1, b1, w2, b2, **kwargs)
    return jnp.transpose(y, (0, 3, 1, 2))


def _reference(x, w1, b1, w2, b2):
    """Pure-JAX reference mirroring the PyTorch Resblock forward (NCHW, f32)."""
    def conv(v, w, b):
        y = jax.lax.conv_general_dilated(
            v, w, window_strides=(1, 1), padding=[(1, 1), (1, 1)],
            dimension_numbers=("NCHW", "OIHW", "NCHW"))
        return y + b[None, :, None, None]
    rs1 = jnp.maximum(conv(x, w1, b1), 0.0)
    rs1 = conv(rs1, w2, b2)
    return x + rs1


if __name__ == "__main__":
    key = jax.random.PRNGKey(0)
    kx, k1, k2, k3, k4 = jax.random.split(key, 5)

    # Small shapes consistent with the module; W*C = 128 = one full lane tile,
    # N = 8 so batch-folding picks B_t = 4 (M = 64 rows/matmul) with a 2-step grid.
    N, C, H, W = 8, 8, 16, 16
    x = jax.random.normal(kx, (N, C, H, W), jnp.float32)
    w1 = jax.random.normal(k1, (C, C, 3, 3), jnp.float32) * 0.1
    b1 = jax.random.normal(k2, (C,), jnp.float32) * 0.1
    w2 = jax.random.normal(k3, (C, C, 3, 3), jnp.float32) * 0.1
    b2 = jax.random.normal(k4, (C,), jnp.float32) * 0.1

    ref = _reference(x, w1, b1, w2, b2)

    # f32 MXU path: close parity with the PyTorch f32 forward.
    out_f32 = jax.block_until_ready(
        resblock_pallas(x, w1, b1, w2, b2, matmul_dtype=jnp.float32))
    assert out_f32.shape == (N, C, H, W)
    err_f32 = float(jnp.max(jnp.abs(out_f32 - ref)))
    assert err_f32 < 5e-4, f"f32 path max abs error {err_f32}"

    # Default bf16 MXU path (f32 accumulation): ~2x MXU throughput on v6e/v7x.
    # Looser tolerance is a deliberate deviation from the f32 reference
    # (bf16-rounded operands; typical error ~1e-2-scale at these magnitudes).
    out_bf16 = jax.block_until_ready(resblock_pallas(x, w1, b1, w2, b2))
    assert out_bf16.shape == (N, C, H, W)
    abs_err = jnp.abs(out_bf16 - ref)
    max_err = float(jnp.max(abs_err))
    mean_err = float(jnp.mean(abs_err))
    assert max_err < 1e-1, f"bf16 path max abs error {max_err}"
    assert mean_err < 2e-2, f"bf16 path mean abs error {mean_err}"

    print("KERNEL_OK")
</pallas_src>

<mosaic_0001>
module attributes {stable_mosaic.version = 11 : i64} {
  func.func @_resblock_kernel(%arg0: i32, %arg1: memref<4x16x128xf32, #tpu.memory_space<vmem>>, %arg2: memref<3x128x128xf32, #tpu.memory_space<vmem>>, %arg3: memref<1x128xf32, #tpu.memory_space<vmem>>, %arg4: memref<3x128x128xf32, #tpu.memory_space<vmem>>, %arg5: memref<1x128xf32, #tpu.memory_space<vmem>>, %arg6: memref<4x16x128xf32, #tpu.memory_space<vmem>>) attributes {dimension_semantics = [#tpu.dimension_semantics<parallel>], iteration_bounds = array<i64: 2>, scalar_prefetch = 0 : i64, scratch_operands = 0 : i64, tpu.core_type = #tpu.core_type<tc>, window_params = [{transform_indices = @transform_0, window_bounds = array<i64: 4, 16, 128>}, {pipeline_mode = #tpu.pipeline_mode<synchronous>, transform_indices = @transform_1, window_bounds = array<i64: 3, 128, 128>}, {pipeline_mode = #tpu.pipeline_mode<synchronous>, transform_indices = @transform_2, window_bounds = array<i64: 1, 128>}, {pipeline_mode = #tpu.pipeline_mode<synchronous>, transform_indices = @transform_3, window_bounds = array<i64: 3, 128, 128>}, {pipeline_mode = #tpu.pipeline_mode<synchronous>, transform_indices = @transform_4, window_bounds = array<i64: 1, 128>}, {transform_indices = @transform_5, window_bounds = array<i64: 4, 16, 128>}]} {
    %c0 = arith.constant 0 : index
    %c0_0 = arith.constant 0 : index
    %c0_1 = arith.constant 0 : index
    %0 = vector.load %arg1[%c0, %c0_0, %c0_1] : memref<4x16x128xf32, #tpu.memory_space<vmem>>, vector<4x16x128xf32>
    %cst = arith.constant 0.000000e+00 : f32
    %1 = vector.broadcast %cst : f32 to vector<4x1x128xf32>
    %2 = vector.extract_strided_slice %0 {offsets = [0, 0, 0], sizes = [4, 15, 128], strides = [1, 1, 1]} : vector<4x16x128xf32> to vector<4x15x128xf32>
    %3 = tpu.concatenate %1, %2 in 1 : vector<4x1x128xf32>, vector<4x15x128xf32> -> vector<4x16x128xf32>
    %4 = vector.extract_strided_slice %0 {offsets = [0, 1, 0], sizes = [4, 15, 128], strides = [1, 1, 1]} : vector<4x16x128xf32> to vector<4x15x128xf32>
    %5 = tpu.concatenate %4, %1 in 1 : vector<4x15x128xf32>, vector<4x1x128xf32> -> vector<4x16x128xf32>
    %6 = vector.shape_cast %3 : vector<4x16x128xf32> to vector<64x128xf32>
    %c0_2 = arith.constant 0 : index
    %c0_3 = arith.constant 0 : index
    %c0_4 = arith.constant 0 : index
    %7 = vector.load %arg2[%c0_2, %c0_3, %c0_4] : memref<3x128x128xf32, #tpu.memory_space<vmem>>, vector<1x128x128xf32>
    %8 = vector.shape_cast %7 : vector<1x128x128xf32> to vector<128x128xf32>
    %cst_5 = arith.constant dense<0.000000e+00> : vector<64x128xf32>
    %9 = tpu.matmul %6, %8, %cst_5 {dimension_numbers = #tpu.dot_dimension_numbers<[1], [0], [0], [1], [0, 0, 1, 1], [], []>} : vector<64x128xf32>, vector<128x128xf32>, vector<64x128xf32> -> vector<64x128xf32>
    %10 = vector.shape_cast %0 : vector<4x16x128xf32> to vector<64x128xf32>
    %c1 = arith.constant 1 : index
    %c0_6 = arith.constant 0 : index
    %c0_7 = arith.constant 0 : index
    %11 = vector.load %arg2[%c1, %c0_6, %c0_7] : memref<3x128x128xf32, #tpu.memory_space<vmem>>, vector<1x128x128xf32>
    %12 = vector.shape_cast %11 : vector<1x128x128xf32> to vector<128x128xf32>
    %cst_8 = arith.constant dense<0.000000e+00> : vector<64x128xf32>
    %13 = tpu.matmul %10, %12, %cst_8 {dimension_numbers = #tpu.dot_dimension_numbers<[1], [0], [0], [1], [0, 0, 1, 1], [], []>} : vector<64x128xf32>, vector<128x128xf32>, vector<64x128xf32> -> vector<64x128xf32>
    %14 = arith.addf %9, %13 : vector<64x128xf32>
    %15 = vector.shape_cast %5 : vector<4x16x128xf32> to vector<64x128xf32>
    %c2 = arith.constant 2 : index
    %c0_9 = arith.constant 0 : index
    %c0_10 = arith.constant 0 : index
    %16 = vector.load %arg2[%c2, %c0_9, %c0_10] : memref<3x128x128xf32, #tpu.memory_space<vmem>>, vector<1x128x128xf32>
    %17 = vector.shape_cast %16 : vector<1x128x128xf32> to vector<128x128xf32>
    %cst_11 = arith.constant dense<0.000000e+00> : vector<64x128xf32>
    %18 = tpu.matmul %15, %17, %cst_11 {dimension_numbers = #tpu.dot_dimension_numbers<[1], [0], [0], [1], [0, 0, 1, 1], [], []>} : vector<64x128xf32>, vector<128x128xf32>, vector<64x128xf32> -> vector<64x128xf32>
    %19 = arith.addf %14, %18 : vector<64x128xf32>
    %c0_12 = arith.constant 0 : index
    %c0_13 = arith.constant 0 : index
    %20 = vector.load %arg3[%c0_12, %c0_13] : memref<1x128xf32, #tpu.memory_space<vmem>>, vector<1x128xf32>
    %21 = vector.broadcast %20 : vector<1x128xf32> to vector<64x128xf32>
    %22 = arith.addf %19, %21 : vector<64x128xf32>
    %cst_14 = arith.constant 0.000000e+00 : f32
    %23 = vector.broadcast %cst_14 : f32 to vector<64x128xf32>
    %24 = arith.maximumf %22, %23 : vector<64x128xf32>
    %25 = vector.shape_cast %24 : vector<64x128xf32> to vector<4x16x128xf32>
    %cst_15 = arith.constant 0.000000e+00 : f32
    %26 = vector.broadcast %cst_15 : f32 to vector<4x1x128xf32>
    %27 = vector.extract_strided_slice %25 {offsets = [0, 0, 0], sizes = [4, 15, 128], strides = [1, 1, 1]} : vector<4x16x128xf32> to vector<4x15x128xf32>
    %28 = tpu.concatenate %26, %27 in 1 : vector<4x1x128xf32>, vector<4x15x128xf32> -> vector<4x16x128xf32>
    %29 = vector.extract_strided_slice %25 {offsets = [0, 1, 0], sizes = [4, 15, 128], strides = [1, 1, 1]} : vector<4x16x128xf32> to vector<4x15x128xf32>
    %30 = tpu.concatenate %29, %26 in 1 : vector<4x15x128xf32>, vector<4x1x128xf32> -> vector<4x16x128xf32>
    %31 = vector.shape_cast %28 : vector<4x16x128xf32> to vector<64x128xf32>
    %c0_16 = arith.constant 0 : index
    %c0_17 = arith.constant 0 : index
    %c0_18 = arith.constant 0 : index
    %32 = vector.load %arg4[%c0_16, %c0_17, %c0_18] : memref<3x128x128xf32, #tpu.memory_space<vmem>>, vector<1x128x128xf32>
    %33 = vector.shape_cast %32 : vector<1x128x128xf32> to vector<128x128xf32>
    %cst_19 = arith.constant dense<0.000000e+00> : vector<64x128xf32>
    %34 = tpu.matmul %31, %33, %cst_19 {dimension_numbers = #tpu.dot_dimension_numbers<[1], [0], [0], [1], [0, 0, 1, 1], [], []>} : vector<64x128xf32>, vector<128x128xf32>, vector<64x128xf32> -> vector<64x128xf32>
    %35 = vector.shape_cast %25 : vector<4x16x128xf32> to vector<64x128xf32>
    %c1_20 = arith.constant 1 : index
    %c0_21 = arith.constant 0 : index
    %c0_22 = arith.constant 0 : index
    %36 = vector.load %arg4[%c1_20, %c0_21, %c0_22] : memref<3x128x128xf32, #tpu.memory_space<vmem>>, vector<1x128x128xf32>
    %37 = vector.shape_cast %36 : vector<1x128x128xf32> to vector<128x128xf32>
    %cst_23 = arith.constant dense<0.000000e+00> : vector<64x128xf32>
    %38 = tpu.matmul %35, %37, %cst_23 {dimension_numbers = #tpu.dot_dimension_numbers<[1], [0], [0], [1], [0, 0, 1, 1], [], []>} : vector<64x128xf32>, vector<128x128xf32>, vector<64x128xf32> -> vector<64x128xf32>
    %39 = arith.addf %34, %38 : vector<64x128xf32>
    %40 = vector.shape_cast %30 : vector<4x16x128xf32> to vector<64x128xf32>
    %c2_24 = arith.constant 2 : index
    %c0_25 = arith.constant 0 : index
    %c0_26 = arith.constant 0 : index
    %41 = vector.load %arg4[%c2_24, %c0_25, %c0_26] : memref<3x128x128xf32, #tpu.memory_space<vmem>>, vector<1x128x128xf32>
    %42 = vector.shape_cast %41 : vector<1x128x128xf32> to vector<128x128xf32>
    %cst_27 = arith.constant dense<0.000000e+00> : vector<64x128xf32>
    %43 = tpu.matmul %40, %42, %cst_27 {dimension_numbers = #tpu.dot_dimension_numbers<[1], [0], [0], [1], [0, 0, 1, 1], [], []>} : vector<64x128xf32>, vector<128x128xf32>, vector<64x128xf32> -> vector<64x128xf32>
    %44 = arith.addf %39, %43 : vector<64x128xf32>
    %c0_28 = arith.constant 0 : index
    %c0_29 = arith.constant 0 : index
    %45 = vector.load %arg5[%c0_28, %c0_29] : memref<1x128xf32, #tpu.memory_space<vmem>>, vector<1x128xf32>
    %46 = vector.broadcast %45 : vector<1x128xf32> to vector<64x128xf32>
    %47 = arith.addf %44, %46 : vector<64x128xf32>
    %48 = vector.shape_cast %47 : vector<64x128xf32> to vector<4x16x128xf32>
    %49 = arith.addf %0, %48 : vector<4x16x128xf32>
    %c0_30 = arith.constant 0 : index
    %c0_31 = arith.constant 0 : index
    %c0_32 = arith.constant 0 : index
    %50 = vector.load %arg6[%c0_30, %c0_31, %c0_32] : memref<4x16x128xf32, #tpu.memory_space<vmem>>, vector<4x16x128xf32>
    tpu.vector_store %arg6[%c0_30, %c0_31, %c0_32], %49 {strides = array<i32>} : memref<4x16x128xf32, #tpu.memory_space<vmem>>, vector<4x16x128xf32>,
    return
  }
  func.func @transform_0(%arg0: i32) -> (i32, i32, i32) {
    %c0_i32 = arith.constant 0 : i32
    %c0_i32_0 = arith.constant 0 : i32
    %c0_i32_1 = arith.constant 0 : i32
    return %arg0, %c0_i32, %c0_i32_0 : i32, i32, i32
  }
  func.func @transform_1(%arg0: i32) -> (i32, i32, i32) {
    %c0_i32 = arith.constant 0 : i32
    %c0_i32_0 = arith.constant 0 : i32
    %c0_i32_1 = arith.constant 0 : i32
    %c0_i32_2 = arith.constant 0 : i32
    return %c0_i32, %c0_i32_0, %c0_i32_1 : i32, i32, i32
  }
  func.func @transform_2(%arg0: i32) -> (i32, i32) {
    %c0_i32 = arith.constant 0 : i32
    %c0_i32_0 = arith.constant 0 : i32
    %c0_i32_1 = arith.constant 0 : i32
    return %c0_i32, %c0_i32_0 : i32, i32
  }
  func.func @transform_3(%arg0: i32) -> (i32, i32, i32) {
    %c0_i32 = arith.constant 0 : i32
    %c0_i32_0 = arith.constant 0 : i32
    %c0_i32_1 = arith.constant 0 : i32
    %c0_i32_2 = arith.constant 0 : i32
    return %c0_i32, %c0_i32_0, %c0_i32_1 : i32, i32, i32
  }
  func.func @transform_4(%arg0: i32) -> (i32, i32) {
    %c0_i32 = arith.constant 0 : i32
    %c0_i32_0 = arith.constant 0 : i32
    %c0_i32_1 = arith.constant 0 : i32
    return %c0_i32, %c0_i32_0 : i32, i32
  }
  func.func @transform_5(%arg0: i32) -> (i32, i32, i32) {
    %c0_i32 = arith.constant 0 : i32
    %c0_i32_0 = arith.constant 0 : i32
    %c0_i32_1 = arith.constant 0 : i32
    return %arg0, %c0_i32, %c0_i32_0 : i32, i32, i32
  }
}

</mosaic_0001>

<bundles_post_ra>
// kernel: tpu_custom_call.1
= control target key start
LH: loop header
LB: loop body
LE: loop exit
PB: predicated region body
PF: predicated region fallthrough
CT: control target
= control target key end

     0   :  { %10 = vsyncpa [#allocation3], 0  ;;  %s2682_s0 = inlined_call_operand.hbm [shape: f32[8,16,128], index: 0, kind: input, shape index: {}]   ;;  %s2683_s1 = inlined_call_operand.hbm [shape: f32[3,128,128], index: 1, kind: input, shape index: {}]   ;;  %s2684_s2 = inlined_call_operand.vmem [shape: f32[1,128], index: 2, kind: input, shape index: {}]   ;;  %s2685_s3 = inlined_call_operand.hbm [shape: f32[3,128,128], index: 3, kind: input, shape index: {}]   ;;  %s2686_s4 = inlined_call_operand.vmem [shape: f32[1,128], index: 4, kind: input, shape index: {}]   ;;  %s2687_s5 = inlined_call_operand.hbm [shape: f32[8,16,128], index: 5, kind: output, shape index: {}]  }
   0x1   :  { %12 = vsyncpa [#allocation3 + $0x1], 0 }
   0x2   :  { %13 = vsyncpa [#allocation6], 0 }
   0x3   :  { %14 = vsyncpa [#allocation4], 0 }
   0x4   :  { %16 = vsyncpa [#allocation4 + $0x1], 0  ;;  %s2253_s18 = smov 0   ;;  %s2255_s19 = smov 0  }
   0x5   :  { %s2257_s20 = smov 0   ;;  %s2259_s21 = smov 0  }
   0x6 LB: > { %s2274_s22 = sadd.s32 4294967295, %s2213_s21   ;;  %s1304_s23 = sadd.s32 4294967294, %s2213_s21   ;;  %s2213_s21 = sphi %s2259_s21, %s2709_s21   ;;  %s2209_s20 = sphi %s2257_s20, %s2708_s20   ;;  %s2205_s19 = sphi %s2255_s19, %s2707_s19   ;;  %s2201_s18 = sphi %s2253_s18, %s2706_s18  }
   0x7   : > { %p42_p0 = scmp.ne.s32.totalorder %s2205_s19, %s2201_s18  ;;  %p2688_p1 = scmp.eq.s32.totalorder %s2274_s22, 0 }
   0x8   : > { %p156_p3 = scmp.eq.s32.totalorder %s1304_s23, 1  ;;  %p1305_p5 = scmp.ge.s32.totalorder %s2213_s21, 1 }
   0x9   : > { %p2283_p4 = por %p2688_p1, %p42_p0  ;;  %p163_p7 = scmp.lt.s32.totalorder %s2213_s21, 3 }
   0xa   : > { %p2288_p6 = por %p156_p3, %p42_p0  ;;  %s2215_s27 = smov [#allocation5]  }
   0xb   : > { %s2691_s24 = scalar_select %p2283_p4, 1, 0 }
   0xc   : > { %s2692_s25 = scalar_select %p2288_p6, 1, 0 }
   0xd   : > { %p2293_p8 = pnand %p1305_p5, %p163_p7  ;;  %s175_s28 = sshll.u32 %s2215_s27, 4  ;;  %s2297_s28 = int_to_ptr.vmem [resolvable:$true] %s175_s28 }
   0xe   : > { %s2216_s30 = smov [#allocation7]   ;;  %s2057_s9 = scalar_lea.hbm %s2683_s1, 6144 }
   0xf   : > { %p1998_p9 = pneg %p2293_p8  ;;  %s191_s6 = sshll.u32 %s2216_s30, 4  ;;  %s2308_s6 = int_to_ptr.vmem [resolvable:$true] %s191_s6 }
  0x10   : > { %p2058_p12 = scmp.ne.s32.totalorder %s2683_s1, %s2057_s9  ;;  %p2064_p5 = scmp.lt.u32.totalorder %s2057_s9, %s2683_s1 }
  0x11   : > { %p2304_p11 = pnand %p1998_p9, %p2688_p1 }
  0x13   : > { %p2059_p13 = pneg %p2304_p11 }
  0x15   : > { %p2060_p0 = pnand %p2059_p13, %p2058_p12 }
  0x17   : > { %p2061_p3 = pneg %p2060_p0 }
  0x19   : > { %p2066_p7 = pnand %p2064_p5, %p2061_p3 }
  0x1b   : > { %2069 = shalt.err (!%p2066_p7)
}
  0x1c   : > { %s2070_s14 = scalar_lea.vmem %s2297_s28, 6144  ;;  %p2078_p2 = scmp.lt.s32.totalorder %s2297_s28, %s2297_s28 }
  0x1d   : > { %p2071_p9 = scmp.ne.s32.totalorder %s2297_s28, %s2070_s14  ;;  %p2079_p12 = scmp.lt.s32.totalorder %s2070_s14, %s2070_s14 }
  0x1f   : > { %p2073_p10 = pnand %p2071_p9, %p2059_p13  ;;  %p2080_p0 = por %p2079_p12, %p2078_p2 }
  0x21   : > { %p2074_p1 = pneg %p2073_p10 }
  0x23   : > { %p2081_p6 = pnand %p2080_p0, %p2074_p1 }
  0x25   : > { %2084 = shalt.err (!%p2081_p6)
}
  0x26   : > { %s2217_s15 = smov 128   ;;  %s2218_s16 = smov 8  }
  0x27   : > { %2001 = dma.hbm_to_vmem [thread:$0]  (!%p2304_p11), %s2683_s1, 6144, %s2297_s28, [#allocation6], %s2217_s15, %s2217_s15, %s2218_s16  }
  0x28   : > { %s2085_s7 = scalar_lea.hbm %s2685_s3, 6144 }
  0x29   : > { %p2086_p1 = scmp.ne.s32.totalorder %s2685_s3, %s2085_s7  ;;  %p2092_p10 = scmp.lt.u32.totalorder %s2085_s7, %s2685_s3 }
  0x2b   : > { %p2088_p2 = pnand %p2086_p1, %p2059_p13 }
  0x2d   : > { %p2089_p6 = pneg %p2088_p2 }
  0x2f   : > { %p2094_p3 = pnand %p2092_p10, %p2089_p6 }
  0x31   : > { %2097 = shalt.err (!%p2094_p3)
}
  0x32   : > { %s2098_s28 = scalar_lea.vmem %s2308_s6, 6144  ;;  %p2106_p12 = scmp.lt.s32.totalorder %s2308_s6, %s2308_s6 }
  0x33   : > { %p2099_p5 = scmp.ne.s32.totalorder %s2308_s6, %s2098_s28  ;;  %p2107_p0 = scmp.lt.s32.totalorder %s2098_s28, %s2098_s28 }
  0x35   : > { %p2101_p7 = pnand %p2099_p5, %p2059_p13  ;;  %p2108_p1 = por %p2107_p0, %p2106_p12 }
  0x37   : > { %p2102_p9 = pneg %p2101_p7 }
  0x39   : > { %p2109_p2 = pnand %p2108_p1, %p2102_p9 }
  0x3b   : > { %2112 = shalt.err (!%p2109_p2)
}
  0x3c   : > { %2004 = dma.hbm_to_vmem [thread:$0]  (!%p2304_p11), %s2685_s3, 6144, %s2308_s6, [#allocation6], %s2217_s15, %s2217_s15, %s2218_s16  }
  0x3d   : > { %s2369_s29 = sadd.s32 1, %s2213_s21   ;;  %s29_s14 = sadd.s32 1, %s2209_s20 }
  0x3e   : > { %s26_s17 = ssub.s32 %s2213_s21, %s2369_s29  ;;  %p36_p13 = scmp.ne.s32.totalorder %s2209_s20, %s2205_s19 }
  0x3f   : > { %p27_p6 = scmp.eq.s32.totalorder %s26_s17, 0  ;;  %p37_p10 = scmp.eq.s32.totalorder %s2213_s21, 0 }
  0x40   : > { %p2695_p3 = scmp.eq.s32.totalorder %s2274_s22, 1  ;;  %p2015_p7 = scmp.lt.s32.totalorder %s2213_s21, 2 }
  0x41   : > { %s2385_s27 = scalar_select %p27_p6, %s2209_s20, %s29_s14  }
  0x42   : > { %p2379_p5 = por %p2695_p3, %p36_p13  ;;  %p38_p9 = por %p37_p10, %p36_p13 }
  0x43   : > { %s208_s30 = sand.u32 1, %s2209_s20   ;;  %s1351_s6 = sshll.u32 %s2213_s21, 10 }
  0x44   : > { %s2696_s23 = scalar_select %p2379_p5, 1, 0 }
  0x45   : > { %s1309_s7 = sshll.u32 %s208_s30, 6  ;;  %s2392_s10 = scalar_lea.hbm %s2682_s0, %s1351_s6 }
  0x46   : > { %s212_s11 = scalar_lea.vmem [#allocation2], %s1309_s7  ;;  %p2396_p11 = pnand %p2015_p7, %p38_p9 }
  0x47   : > { %s220_s28 = sshll.u32 %s212_s11, 4  ;;  %s2400_s13 = scalar_lea.sflag [#allocation3], %s208_s30  ;;  %s2394_s28 = int_to_ptr.vmem [resolvable:$true] %s220_s28 }
  0x48   : > { %s2113_s14 = scalar_lea.hbm %s2392_s10, 1024  ;;  %p2115_p0 = pneg %p2396_p11 }
  0x49   : > { %p2114_p12 = scmp.ne.s32.totalorder %s2392_s10, %s2113_s14  ;;  %s2118_s6 = scalar_lea.hbm %s2682_s0, 2048 }
  0x4a   : > { %p2119_p13 = scmp.lt.u32.totalorder %s2392_s10, %s2682_s0  ;;  %p2120_p6 = scmp.lt.u32.totalorder %s2118_s6, %s2113_s14 }
  0x4b   : > { %p2116_p1 = pnand %p2115_p0, %p2114_p12  ;;  %p2122_p3 = scmp.lt.u32.totalorder %s2113_s14, %s2392_s10 }
  0x4c   : > { %p2121_p10 = por %p2120_p6, %p2119_p13 }
  0x4d   : > { %p2117_p2 = pneg %p2116_p1 }
  0x4e   : > { %p2123_p7 = por %p2122_p3, %p2121_p10 }
  0x50   : > { %p2124_p9 = pnand %p2123_p7, %p2117_p2 }
  0x52   : > { %2127 = shalt.err (!%p2124_p9)
}
  0x53   : > { %s2128_s30 = scalar_lea.vmem %s2394_s28, 1024  ;;  %s2219_s11 = smov [#allocation2]  }
  0x54   : > { %p2129_p12 = scmp.ne.s32.totalorder %s2394_s28, %s2128_s30  ;;  %s2133_s17 = sshll.u32 %s2219_s11, 4  ;;  %s2134_s17 = int_to_ptr.vmem [resolvable:$false] %s2133_s17 }
  0x55   : > { %s2135_s7 = scalar_lea.vmem %s2134_s17, 2048  ;;  %p2136_p4 = scmp.lt.s32.totalorder %s2394_s28, %s2134_s17 }
  0x56   : > { %p2131_p1 = pnand %p2129_p12, %p2115_p0  ;;  %p2137_p13 = scmp.lt.s32.totalorder %s2135_s7, %s2128_s30 }
  0x58   : > { %p2132_p5 = pneg %p2131_p1  ;;  %p2138_p6 = por %p2137_p13, %p2136_p4 }
  0x5a   : > { %p2139_p10 = pnand %p2138_p6, %p2132_p5 }
  0x5c   : > { %2142 = shalt.err (!%p2139_p10)
}
  0x5d   : > { %2008 = dma.hbm_to_vmem [thread:$0]  (!%p2396_p11), %s2392_s10, 1024, %s2394_s28, %s2400_s13, %s2217_s15, %s2217_s15, %s2218_s16  }
  0x5e   : > { %232 = sbr.rel (%p2293_p8) target bundleno = 730 (0x2da), region = 40  ;;  %s2434_s14 = sand.u32 (!%p2293_p8), 1, %s2205_s19  }
  0x5f   : > { %s1314_s6 = sshll.u32 (!%p2293_p8), %s2434_s14, 6  ;;  %s235_s8 = scalar_lea.sflag (!%p2293_p8), [#allocation3], %s2434_s14 }
  0x60   : > { %s2440_s12 = scalar_lea.vmem (!%p2293_p8), [#allocation2], %s1314_s6  ;;  %p2698_p4 = scmp.ne.s32.totalorder (!%p2293_p8), %s2691_s24, 0 }
  0x65   : > { %2188 = dma.done.wait (%p2698_p4), %s235_s8, 1024  }
  0x66   : > { %2190 = vsyncadd (%p2698_p4), %s235_s8, 4294966272  ;;  %p2699_p5 = scmp.eq.s32.totalorder %s2274_s22, 0 }
  0x68   : > { %2192 = dma.done.wait (%p2699_p5), [#allocation6], 12288   ;;  %p2700_p8 = pmov %p2699_p5 }
  0x69   : > { %v358_v0 = vld [vmem:[#allocation5 + $0x80] sm:$0xff]  ;;  %v359_v1 = vld [vmem:[#allocation5 + $0x88] sm:$0xff]  ;;  %v360_v2 = vld [vmem:[#allocation5 + $0x90] sm:$0xff]  ;;  %vm291_vm0 = vcmask 1040384   ;;  %vm316_vm2 = vcmask 1046528   ;;  %s272_s10 = scalar_lea.vmem [#allocation8], %s1314_s6 }
  0x6a   : > { %2194 = vsyncadd (%p2700_p8), [#allocation6], 4294955008  ;;  %v1762_v3 = vpack.c.bf16 %v359_v1, %v358_v0  ;;  %v361_v4 = vld [vmem:[#allocation5 + $0x98] sm:$0xff]  ;;  %v362_v6 = vld [vmem:[#allocation5 + $0xa0] sm:$0xff]  ;;  %s1212_s28 = sshll.u32 %s272_s10, 4  ;;  %s1353_s13 = sshll.u32 %s2274_s22, 10  ;;  %s2631_s28 = int_to_ptr.vmem [resolvable:$true] %s1212_s28 }
  0x6b   : > { %v1766_v5 = vpack.c.bf16 %v361_v4, %v360_v2  ;;  %v363_v7 = vld [vmem:[#allocation5 + $0xa8] sm:$0xff]  ;;  %v2451_v9 = vld [vmem:[%s2440_s12] sm:$0xff]  ;;  %v364_v10 = vld [vmem:[#allocation5 + $0xb0] sm:$0xff]  ;;  %s2637_s11 = scalar_lea.hbm %s2687_s5, %s1353_s13  ;;  %s1198_s22 = scalar_lea.sflag [#allocation4], %s2434_s14 }
  0x6c   : > { %1763 = vmatprep.subr.bf16.mxu0 %v1762_v3  ;;  %v1770_v8 = vpack.c.bf16 %v363_v7, %v362_v6  ;;  %v365_v11 = vld [vmem:[#allocation5 + $0xb8] sm:$0xff]  ;;  %1530 = vmatprep.mubr.f32.mxu0 %v2451_v9  ;;  %v366_v13 = vld [vmem:[#allocation5 + $0xc0] sm:$0xff]  ;;  %v367_v14 = vld [vmem:[#allocation5 + $0xc8] sm:$0xff]  ;;  %s2143_s17 = scalar_lea.vmem %s2631_s28, 1024  ;;  %p2703_p0 = scmp.ne.s32.totalorder %s2696_s23, 0 }
  0x6d   : > { %1765 = vmatpush3.bf16.msra.mxu0 %v1762_v3  ;;  %v1774_v12 = vpack.c.bf16 %v365_v11, %v364_v10  ;;  %v1778_v15 = vpack.c.bf16 %v367_v14, %v366_v13  ;;  %v368_v16 = vld [vmem:[#allocation5 + $0xd0] sm:$0xff]  ;;  %v369_v17 = vld [vmem:[#allocation5 + $0xd8] sm:$0xff]  ;;  %v370_v19 = vld [vmem:[#allocation5 + $0xe0] sm:$0xff]  ;;  %v292_v3 = vrot.slane %v2451_v9, 7  ;;  %p2144_p11 = scmp.ne.s32.totalorder %s2631_s28, %s2143_s17  ;;  %s2220_s7 = smov [#allocation8]  }
  0x6e   : > { %1767 = vmatprep.subr.bf16.mxu0 %v1766_v5  ;;  %v1782_v18 = vpack.c.bf16 %v369_v17, %v368_v16  ;;  %v371_v20 = vld [vmem:[#allocation5 + $0xe8] sm:$0xff]  ;;  %v810_v21 = vld [vmem:[#allocation7 + $0x80] sm:$0xff]  ;;  %v812_v23 = vld [vmem:[#allocation7 + $0x90] sm:$0xff]  ;;  %s2147_s6 = sshll.u32 %s2220_s7, 4  ;;  %s2148_s6 = int_to_ptr.vmem [resolvable:$false] %s2147_s6 }
  0x6f   : > { %v811_v22 = vld [vmem:[#allocation7 + $0x88] sm:$0xff]  ;;  %v813_v24 = vld [vmem:[#allocation7 + $0x98] sm:$0xff]  ;;  %v1786_v27 = vpack.c.bf16 %v371_v20, %v370_v19  ;;  %v814_v28 = vld [vmem:[#allocation7 + $0xa0] sm:$0xff]  ;;  %p2145_p2 = pnand %p2144_p11, %p2703_p0  ;;  %s2149_s8 = scalar_lea.vmem %s2148_s6, 2048 }
  0x70   : > { %v1858_v25 = vpack.c.bf16 %v811_v22, %v810_v21  ;;  %v1862_v26 = vpack.c.bf16 %v813_v24, %v812_v23  ;;  %v815_v29 = vld [vmem:[#allocation7 + $0xa8] sm:$0xff]  ;;  %v372_v30 = vld [vmem:[#allocation5 + $0xf0] sm:$0xff]  ;;  %v373_v31 = vld [vmem:[#allocation5 + $0xf8] sm:$0xff]  ;;  %p2150_p7 = scmp.lt.s32.totalorder %s2631_s28, %s2148_s6  ;;  %p2151_p9 = scmp.lt.s32.totalorder %s2149_s8, %s2143_s17 }
  0x71   : > { %1769 = vmatpush3.bf16.msra.mxu0 %v1766_v5  ;;  %v1866_v32 = vpack.c.bf16 %v815_v29, %v814_v28  ;;  %v1790_v33 = vpack.c.bf16 %v373_v31, %v372_v30  ;;  %v816_v34 = vld [vmem:[#allocation7 + $0xb0] sm:$0xff]  ;;  %v817_v35 = vld [vmem:[#allocation7 + $0xb8] sm:$0xff]  ;;  %v341_v36 = vld [vmem:[#allocation5] sm:$0xff]  ;;  %p2146_p3 = pneg %p2145_p2 }
  0x72   : > { %1771 = vmatprep.subr.bf16.mxu0 %v1770_v8  ;;  %1859 = vmatprep.subr.bf16.mxu1 %v1858_v25  ;;  %v342_v37 = vld [vmem:[#allocation5 + $0x8] sm:$0xff]  ;;  %v1870_v38 = vpack.c.bf16 %v817_v35, %v816_v34  ;;  %v343_v40 = vld [vmem:[#allocation5 + $0x10] sm:$0xff]  ;;  %v344_v41 = vld [vmem:[#allocation5 + $0x18] sm:$0xff]  ;;  %p2152_p12 = por %p2151_p9, %p2150_p7 }
  0x73   : > { %1861 = vmatpush3.bf16.msra.mxu1 %v1858_v25  ;;  %v1794_v39 = vpack.c.bf16 %v342_v37, %v341_v36  ;;  %v818_v42 = vld [vmem:[#allocation7 + $0xc0] sm:$0xff]  ;;  %v819_v43 = vld [vmem:[#allocation7 + $0xc8] sm:$0xff]  ;;  %v1798_v45 = vpack.c.bf16 %v344_v41, %v343_v40  ;;  %v2458_v47 = vld [vmem:[%s2440_s12 + $0x10] sm:$0xff] }
  0x74   : > { %1863 = vmatprep.subr.bf16.mxu1 %v1862_v26  ;;  %v2455_v44 = vld [vmem:[%s2440_s12 + $0x8] sm:$0xff]  ;;  %v345_v46 = vld [vmem:[#allocation5 + $0x20] sm:$0xff]  ;;  %v1874_v48 = vpack.c.bf16 %v819_v43, %v818_v42  ;;  %v820_v50 = vld [vmem:[#allocation7 + $0xd0] sm:$0xff]  ;;  %v295_v23 = vrot.slane %v2458_v47, 7  ;;  %p2153_p1 = pnand %p2152_p12, %p2146_p3 }
  0x75   : > { %1773 = vmatpush3.bf16.msra.mxu0 %v1770_v8  ;;  %v346_v49 = vld [vmem:[#allocation5 + $0x28] sm:$0xff]  ;;  %v821_v51 = vld [vmem:[#allocation7 + $0xd8] sm:$0xff]  ;;  %v347_v54 = vld [vmem:[#allocation5 + $0x30] sm:$0xff] }
  0x76   : > { %1775 = vmatprep.subr.bf16.mxu0 %v1774_v12  ;;  %v2463_v52 = vld [vmem:[%s2440_s12 + $0x18] sm:$0xff]  ;;  %v1802_v53 = vpack.c.bf16 %v346_v49, %v345_v46  ;;  %v2466_v55 = vld [vmem:[%s2440_s12 + $0x20] sm:$0xff]  ;;  %v1878_v56 = vpack.c.bf16 %v821_v51, %v820_v50  ;;  %v823_v59 = vld [vmem:[#allocation7 + $0xe8] sm:$0xff] }
  0x77   : > { %1865 = vmatpush3.bf16.msra.mxu1 %v1862_v26  ;;  %v348_v57 = vld [vmem:[#allocation5 + $0x38] sm:$0xff]  ;;  %v822_v58 = vld [vmem:[#allocation7 + $0xe0] sm:$0xff]  ;;  %v2471_v60 = vld [vmem:[%s2440_s12 + $0x28] sm:$0xff]  ;;  %v296_v24 = vrot.slane %v2463_v52, 7  ;;  %v298_v29 = vrot.slane %v2466_v55, 7 }
  0x78   : > { %1867 = vmatprep.subr.bf16.mxu1 %v1866_v32  ;;  %v1806_v61 = vpack.c.bf16 %v348_v57, %v347_v54  ;;  %v2474_v62 = vld [vmem:[%s2440_s12 + $0x30] sm:$0xff]  ;;  %v1882_v63 = vpack.c.bf16 %v823_v59, %v822_v58  ;;  %v349_v0 = vld [vmem:[#allocation5 + $0x40] sm:$0xff]  ;;  %v350_v1 = vld [vmem:[#allocation5 + $0x48] sm:$0xff]  ;;  %v299_v30 = vrot.slane %v2471_v60, 7  ;;  %v320_v58 = vrot.slane %v2458_v47, 1 }
  0x79   : > { %1777 = vmatpush3.bf16.msra.mxu0 %v1774_v12  ;;  %v2479_v2 = vld [vmem:[%s2440_s12 + $0x38] sm:$0xff]  ;;  %v1810_v4 = vpack.c.bf16 %v350_v1, %v349_v0  ;;  %vm2483_vm1 = vmneg %vm291_vm0  ;;  %v351_v6 = vld [vmem:[#allocation5 + $0x50] sm:$0xff]  ;;  %v297_v28 = vsel %vm291_vm0, %v295_v23, %v296_v24  ;;  %v301_v35 = vrot.slane %v2474_v62, 7  ;;  %v321_v59 = vrot.slane %v2463_v52, 1 }
  0x7a   : > { %1779 = vmatprep.subr.bf16.mxu0 %v1778_v15  ;;  %v352_v7 = vld [vmem:[#allocation5 + $0x58] sm:$0xff]  ;;  %v353_v10 = vld [vmem:[#allocation5 + $0x60] sm:$0xff]  ;;  %v354_v11 = vld [vmem:[#allocation5 + $0x68] sm:$0xff]  ;;  %v300_v34 = vsel %vm291_vm0, %v298_v29, %v299_v30  ;;  %v302_v36 = vrot.slane %v2479_v2, 7  ;;  %v324_v0 = vrot.slane %v2471_v60, 1 }
  0x7b   : > { %1869 = vmatpush3.bf16.msra.mxu1 %v1866_v32  ;;  %v1814_v8 = vpack.c.bf16 %v352_v7, %v351_v6  ;;  %v1818_v12 = vpack.c.bf16 %v354_v11, %v353_v10  ;;  %v355_v13 = vld [vmem:[#allocation5 + $0x70] sm:$0xff]  ;;  %v356_v14 = vld [vmem:[#allocation5 + $0x78] sm:$0xff]  ;;  %v585_v16 = vld [vmem:[#allocation5 + $0x100] sm:$0xff] }
  0x7c   : > { %1871 = vmatprep.subr.bf16.mxu1 %v1870_v38  ;;  %v586_v17 = vld [vmem:[#allocation5 + $0x108] sm:$0xff]  ;;  %v587_v20 = vld [vmem:[#allocation5 + $0x110] sm:$0xff]  ;;  %v588_v21 = vld [vmem:[#allocation5 + $0x118] sm:$0xff]  ;;  %v303_v42 = vsel %vm291_vm0, %v301_v35, %v302_v36 }
  0x7d   : > { %1781 = vmatpush3.bf16.msra.mxu0 %v1778_v15  ;;  %v1822_v15 = vpack.c.bf16 %v356_v14, %v355_v13  ;;  %v1826_v19 = vpack.c.bf16 %v586_v17, %v585_v16  ;;  %v1830_v25 = vpack.c.bf16 %v588_v21, %v587_v20  ;;  %v589_v26 = vld [vmem:[#allocation5 + $0x120] sm:$0xff]  ;;  %v591_v32 = vld [vmem:[#allocation5 + $0x130] sm:$0xff]  ;;  %v594_v41 = vld [vmem:[#allocation5 + $0x148] sm:$0xff] }
  0x7e   : > { %1783 = vmatprep.subr.bf16.mxu0 %v1782_v18  ;;  %v593_v40 = vld [vmem:[#allocation5 + $0x140] sm:$0xff]  ;;  %v595_v46 = vld [vmem:[#allocation5 + $0x150] sm:$0xff]  ;;  %v598_v51 = vld [vmem:[#allocation5 + $0x168] sm:$0xff] }
  0x7f   : > { %1873 = vmatpush3.bf16.msra.mxu1 %v1870_v38  ;;  %v317_v38 = vrot.slane %v2451_v9, 1  ;;  %v1842_v43 = vpack.c.bf16 %v594_v41, %v593_v40  ;;  %v597_v50 = vld [vmem:[#allocation5 + $0x160] sm:$0xff]  ;;  %v599_v54 = vld [vmem:[#allocation5 + $0x170] sm:$0xff]  ;;  %v796_v20 = vld [vmem:[#allocation7 + $0x18] sm:$0xff] }
  0x80   : > { %1875 = vmatprep.subr.bf16.mxu1 %v1874_v48  ;;  %v824_v7 = vld [vmem:[#allocation7 + $0xf0] sm:$0xff]  ;;  %v793_v11 = vld [vmem:[#allocation7] sm:$0xff] }
  0x81   : > { %1785 = vmatpush3.bf16.msra.mxu0 %v1782_v18  ;;  %v293_v18 = vrot.slane %v2455_v44, 7  ;;  %v1330_v14 = vld [vmem:[%s2684_s2] ss:$0 sm:$0xff] }
  0x82   : > { %1787 = vmatprep.subr.bf16.mxu0 %v1786_v27 }
  0x83   : > { %1877 = vmatpush3.bf16.msra.mxu1 %v1874_v48  ;;  %v294_v22 = vsel %vm291_vm0, %v292_v3, %v293_v18  ;;  %v596_v48 = vld [vmem:[#allocation5 + $0x158] sm:$0xff] }
  0x84   : > { %1879 = vmatprep.subr.bf16.mxu1 %v1878_v56  ;;  %v1846_v49 = vpack.c.bf16 %v596_v48, %v595_v46 }
  0x85   : > { %1789 = vmatpush3.bf16.msra.mxu0 %v1786_v27  ;;  %v590_v27 = vld [vmem:[#allocation5 + $0x128] sm:$0xff] }
  0x86   : > { %1791 = vmatprep.subr.bf16.mxu0 %v1790_v33  ;;  %v1834_v31 = vpack.c.bf16 %v590_v27, %v589_v26 }
  0x87   : > { %1881 = vmatpush3.bf16.msra.mxu1 %v1878_v56  ;;  %v600_v56 = vld [vmem:[#allocation5 + $0x178] sm:$0xff] }
  0x88   : > { %1883 = vmatprep.subr.bf16.mxu1 %v1882_v63  ;;  %v1854_v57 = vpack.c.bf16 %v600_v56, %v599_v54 }
  0x89   : > { %1793 = vmatpush3.bf16.msra.mxu0 %v1790_v33  ;;  %v592_v33 = vld [vmem:[#allocation5 + $0x138] sm:$0xff] }
  0x8a   : > { %1795 = vmatprep.subr.bf16.mxu0 %v1794_v39  ;;  %v1838_v37 = vpack.c.bf16 %v592_v33, %v591_v32  ;;  %v797_v32 = vld [vmem:[#allocation7 + $0x20] sm:$0xff]  ;;  %v798_v33 = vld [vmem:[#allocation7 + $0x28] sm:$0xff] }
  0x8b   : > { %1885 = vmatpush3.bf16.msra.mxu1 %v1882_v63  ;;  %v323_v63 = vrot.slane %v2466_v55, 1 }
  0x8c   : > { %1531 = vmatmul.mubr.f32.vlgmr.msra.gmra.mrb[0].mxu0 %v2455_v44 }
  0x8d   : > { %1797 = vmatpush3.bf16.msra.mxu0 %v1794_v39  ;;  %1533 = vmatprep.mubr.f32.mxu0 %v2458_v47  ;;  %v318_v39 = vrot.slane %v2455_v44, 1  ;;  %v325_v1 = vsel %vm316_vm2, %v323_v63, %v324_v0 }
  0x8e   : > { %1799 = vmatprep.subr.bf16.mxu0 %v1798_v45 }
  0x90   : > { %1534 = vmatmul.mubr.f32.gmra.mrb[2].mxu0 %v2463_v52 }
  0x91   : > { %1801 = vmatpush3.bf16.msra.mxu0 %v1798_v45  ;;  %1536 = vmatprep.mubr.f32.mxu0 %v2466_v55  ;;  %v319_v45 = vsel %vm316_vm2, %v317_v38, %v318_v39 }
  0x92   : > { %1803 = vmatprep.subr.bf16.mxu0 %v1802_v53 }
  0x94   : > { %1537 = vmatmul.mubr.f32.gmra.mrb[4].mxu0 %v2471_v60 }
  0x95   : > { %1805 = vmatpush3.bf16.msra.mxu0 %v1802_v53  ;;  %1539 = vmatprep.mubr.f32.mxu0 %v2474_v62  ;;  %v1850_v53 = vpack.c.bf16 %v598_v51, %v597_v50  ;;  %v800_v50 = vld [vmem:[#allocation7 + $0x38] sm:$0xff] }
  0x96   : > { %1807 = vmatprep.subr.bf16.mxu0 %v1806_v61 }
  0x98   : > { %1540 = vmatmul.mubr.f32.gmra.mrb[6].mxu0 %v2479_v2 }
  0x99   : > { %1809 = vmatpush3.bf16.msra.mxu0 %v1806_v61  ;;  %1574 = vmatprep.mubr.msk.f32.mxu0 %vm2483_vm1, %v292_v3  ;;  %v322_v61 = vsel %vm316_vm2, %v320_v58, %v321_v59  ;;  %v326_v3 = vrot.slane %v2474_v62, 1 }
  0x9a   : > { %1811 = vmatprep.subr.bf16.mxu0 %v1810_v4 }
  0x9d   : > { %1813 = vmatpush3.bf16.msra.mxu0 %v1810_v4  ;;  %v327_v4 = vrot.slane %v2479_v2, 1 }
  0x9e   : > { %1815 = vmatprep.subr.bf16.mxu0 %v1814_v8 }
  0x9f   : > { %v328_v6 = vsel %vm316_vm2, %v326_v3, %v327_v4 }
  0xa1   : > { %1817 = vmatpush3.bf16.msra.mxu0 %v1814_v8  ;;  %v825_v8 = vld [vmem:[#allocation7 + $0xf8] sm:$0xff] }
  0xa2   : > { %1819 = vmatprep.subr.bf16.mxu0 %v1818_v12  ;;  %v1886_v10 = vpack.c.bf16 %v825_v8, %v824_v7  ;;  %v802_v7 = vld [vmem:[#allocation7 + $0x48] sm:$0xff] }
  0xa4   : > { %1887 = vmatprep.subr.bf16.mxu1 %v1886_v10 }
  0xa5   : > { %1821 = vmatpush3.bf16.msra.mxu0 %v1818_v12  ;;  %1889 = vmatpush3.bf16.msra.mxu1 %v1886_v10  ;;  %v794_v12 = vld [vmem:[#allocation7 + $0x8] sm:$0xff] }
  0xa6   : > { %1823 = vmatprep.subr.bf16.mxu0 %v1822_v15  ;;  %v1890_v13 = vpack.c.bf16 %v794_v12, %v793_v11 }
  0xa8   : > { %1891 = vmatprep.subr.bf16.mxu1 %v1890_v13 }
  0xa9   : > { %1825 = vmatpush3.bf16.msra.mxu0 %v1822_v15 }
  0xaa   : > { %1827 = vmatprep.subr.bf16.mxu0 %v1826_v19 }
  0xac   : > { %1575 = vmatmul.mubr.f32.vlgmr.msra.gmra.mrb[0].mxu0 %v294_v22 }
  0xad   : > { %1829 = vmatpush3.bf16.msra.mxu0 %v1826_v19  ;;  %1577 = vmatprep.mubr.msk.f32.mxu0 %vm2483_vm1, %v295_v23  ;;  %v795_v19 = vld [vmem:[#allocation7 + $0x10] sm:$0xff] }
  0xae   : > { %1831 = vmatprep.subr.bf16.mxu0 %v1830_v25 }
  0xb0   : > { %1578 = vmatmul.mubr.f32.gmra.mrb[2].mxu0 %v297_v28  ;;  %v1894_v28 = vpack.c.bf16 %v796_v20, %v795_v19  ;;  %v804_v19 = vld [vmem:[#allocation7 + $0x58] sm:$0xff] }
  0xb1   : > { %1833 = vmatpush3.bf16.msra.mxu0 %v1830_v25  ;;  %1580 = vmatprep.mubr.msk.f32.mxu0 %vm2483_vm1, %v298_v29 }
  0xb2   : > { %1835 = vmatprep.subr.bf16.mxu0 %v1834_v31 }
  0xb4   : > { %1581 = vmatmul.mubr.f32.gmra.mrb[4].mxu0 %v300_v34 }
  0xb5   : > { %1837 = vmatpush3.bf16.msra.mxu0 %v1834_v31  ;;  %1583 = vmatprep.mubr.msk.f32.mxu0 %vm2483_vm1, %v301_v35 }
  0xb6   : > { %1839 = vmatprep.subr.bf16.mxu0 %v1838_v37 }
  0xb8   : > { %1584 = vmatmul.mubr.f32.gmra.mrb[6].mxu0 %v303_v42 }
  0xb9   : > { %1841 = vmatpush3.bf16.msra.mxu0 %v1838_v37  ;;  %1618 = vmatprep.mubr.f32.mxu0 %v319_v45 }
  0xba   : > { %1843 = vmatprep.subr.bf16.mxu0 %v1842_v43 }
  0xbd   : > { %1845 = vmatpush3.bf16.msra.mxu0 %v1842_v43  ;;  %v1898_v43 = vpack.c.bf16 %v798_v33, %v797_v32  ;;  %v1038_v32 = vld [vmem:[#allocation7 + $0x108] sm:$0xff] }
  0xbe   : > { %1847 = vmatprep.subr.bf16.mxu0 %v1846_v49 }
  0xc1   : > { %1849 = vmatpush3.bf16.msra.mxu0 %v1846_v49  ;;  %v799_v49 = vld [vmem:[#allocation7 + $0x30] sm:$0xff] }
  0xc2   : > { %1851 = vmatprep.subr.bf16.mxu0 %v1850_v53 }
  0xc5   : > { %1853 = vmatpush3.bf16.msra.mxu0 %v1850_v53 }
  0xc6   : > { %1855 = vmatprep.subr.bf16.mxu0 %v1854_v57 }
  0xc9   : > { %1857 = vmatpush3.bf16.msra.mxu0 %v1854_v57 }
  0xcc   : > { %1619 = vmatmul.mubr.msk.f32.vlgmr.msra.gmra.mrb[0].mxu0 %vm316_vm2, %v318_v39 }
  0xcd   : > { %1621 = vmatprep.mubr.f32.mxu0 %v322_v61 }
  0xd0   : > { %1622 = vmatmul.mubr.msk.f32.gmra.mrb[2].mxu0 %vm316_vm2, %v321_v59 }
  0xd1   : > { %1624 = vmatprep.mubr.f32.mxu0 %v325_v1 }
  0xd4   : > { %1625 = vmatmul.mubr.msk.f32.gmra.mrb[4].mxu0 %vm316_vm2, %v324_v0  ;;  %v1902_v0 = vpack.c.bf16 %v800_v50, %v799_v49  ;;  %v1044_v49 = vld [vmem:[#allocation7 + $0x138] sm:$0xff] }
  0xd5   : > { %1627 = vmatprep.mubr.f32.mxu0 %v328_v6  ;;  %v801_v6 = vld [vmem:[#allocation7 + $0x40] sm:$0xff] }
  0xd8   : > { %1628 = vmatmul.mubr.msk.f32.gmra.mrb[6].mxu0 %vm316_vm2, %v327_v4 }
 0x19f   : > { %v1620_v15 = vpop.f32.mrb[0].mxu0 }
 0x1a0   : > { %v722_v16 = vadd.f32 %v1620_v15, %v1330_v14  ;;  %v667_v17 = vpop.f32.mrb[1].mxu0  ;;  %v1906_v15 = vpack.c.bf16 %v802_v7, %v801_v6 }
 0x1a1   : > { %v721_v18 = vadd.f32 %v1330_v14, %v667_v17 }
 0x1a2   : > { %v2526_v21 = vmax.f32 %v722_v16, 0.0 }
 0x1a3   : > { %v2528_v22 = vmax.f32 %v721_v18, 0.0  ;;  %v1623_v23 = vpop.f32.mrb[2].mxu0  ;;  %v803_v18 = vld [vmem:[#allocation7 + $0x50] sm:$0xff] }
 0x1a4   : > { %v746_v24 = vrot.slane %v2526_v21, 7  ;;  %v770_v25 = vrot.slane %v2526_v21, 1  ;;  %v724_v26 = vadd.f32 %v1623_v23, %v1330_v14  ;;  %v677_v27 = vpop.f32.mrb[3].mxu0  ;;  %v1910_v23 = vpack.c.bf16 %v804_v19, %v803_v18 }
 0x1a5   : > { %v745_v29 = vrot.slane %v2528_v22, 7  ;;  %v769_v30 = vrot.slane %v2528_v22, 1  ;;  %v723_v31 = vadd.f32 %v1330_v14, %v677_v27  ;;  %1662 = vmatprep.mubr.f32.mxu1 %v2528_v22 }
 0x1a6   : > { %v2535_v34 = vmax.f32 %v724_v26, 0.0  ;;  %1663 = vmatmul.mubr.f32.vlgmr.msra.gmra.mrb[0].mxu1 %v2526_v21  ;;  %v806_v26 = vld [vmem:[#allocation7 + $0x68] sm:$0xff]  ;;  %v1343_v21 = vld [vmem:[%s2686_s4] ss:$0 sm:$0xff] }
 0x1a7   : > { %v2538_v35 = vmax.f32 %v723_v31, 0.0  ;;  %1893 = vmatpush3.bf16.msra.mxu1 %v1890_v13  ;;  %v1626_v36 = vpop.f32.mrb[4].mxu0  ;;  %v2541_v37 = vsel %vm291_vm0, %v745_v29, %v746_v24  ;;  %v2546_v38 = vsel %vm316_vm2, %v769_v30, %v770_v25  ;;  %v805_v24 = vld [vmem:[#allocation7 + $0x60] sm:$0xff]  ;;  %v808_v30 = vld [vmem:[#allocation7 + $0x78] sm:$0xff] }
 0x1a8   : > { %v749_v39 = vrot.slane %v2535_v34, 7  ;;  %v773_v40 = vrot.slane %v2535_v34, 1  ;;  %v726_v41 = vadd.f32 %v1626_v36, %v1330_v14  ;;  %v687_v42 = vpop.f32.mrb[5].mxu0  ;;  %1895 = vmatprep.subr.bf16.mxu1 %v1894_v28  ;;  %v1914_v27 = vpack.c.bf16 %v806_v26, %v805_v24  ;;  %v1039_v36 = vld [vmem:[#allocation7 + $0x110] sm:$0xff] }
 0x1a9   : > { %v748_v45 = vrot.slane %v2538_v35, 7  ;;  %v772_v46 = vrot.slane %v2538_v35, 1  ;;  %v725_v48 = vadd.f32 %v1330_v14, %v687_v42  ;;  %1665 = vmatprep.mubr.f32.mxu1 %v2538_v35  ;;  %v1041_v42 = vld [vmem:[#allocation7 + $0x120] sm:$0xff] }
 0x1aa   : > { %v2553_v51 = vmax.f32 %v726_v41, 0.0  ;;  %1666 = vmatmul.mubr.f32.gmra.mrb[2].mxu1 %v2535_v34 }
 0x1ab   : > { %v2556_v53 = vmax.f32 %v725_v48, 0.0  ;;  %1897 = vmatpush3.bf16.msra.mxu1 %v1894_v28  ;;  %v1629_v54 = vpop.f32.mrb[6].mxu0  ;;  %v2561_v56 = vsel %vm291_vm0, %v748_v45, %v749_v39  ;;  %v2566_v57 = vsel %vm316_vm2, %v772_v46, %v773_v40  ;;  %v807_v28 = vld [vmem:[#allocation7 + $0x70] sm:$0xff]  ;;  %v1040_v39 = vld [vmem:[#allocation7 + $0x118] sm:$0xff] }
 0x1ac   : > { %v752_v58 = vrot.slane %v2553_v51, 7  ;;  %v776_v59 = vrot.slane %v2553_v51, 1  ;;  %v728_v61 = vadd.f32 %v1629_v54, %v1330_v14  ;;  %v697_v63 = vpop.f32.mrb[7].mxu0  ;;  %1899 = vmatprep.subr.bf16.mxu1 %v1898_v43  ;;  %v1918_v31 = vpack.c.bf16 %v808_v30, %v807_v28  ;;  %v1043_v48 = vld [vmem:[#allocation7 + $0x130] sm:$0xff]  ;;  %v1048_v54 = vld [vmem:[#allocation7 + $0x158] sm:$0xff] }
 0x1ad   : > { %v751_v1 = vrot.slane %v2556_v53, 7  ;;  %v775_v3 = vrot.slane %v2556_v53, 1  ;;  %v727_v4 = vadd.f32 %v1330_v14, %v697_v63  ;;  %1668 = vmatprep.mubr.f32.mxu1 %v2556_v53  ;;  %v1926_v41 = vpack.c.bf16 %v1040_v39, %v1039_v36  ;;  %v1045_v53 = vld [vmem:[#allocation7 + $0x140] sm:$0xff] }
 0x1ae   : > { %v2573_v8 = vmax.f32 %v728_v61, 0.0  ;;  %1669 = vmatmul.mubr.f32.gmra.mrb[4].mxu1 %v2553_v51  ;;  %v1934_v50 = vpack.c.bf16 %v1044_v49, %v1043_v48  ;;  %v1050_v61 = vld [vmem:[#allocation7 + $0x168] sm:$0xff] }
 0x1af   : > { %v735_v10 = vmax.f32 %v727_v4, 0.0  ;;  %1901 = vmatpush3.bf16.msra.mxu1 %v1898_v43  ;;  %v753_v11 = vsel %vm291_vm0, %v751_v1, %v752_v58  ;;  %v2580_v12 = vsel %vm316_vm2, %v775_v3, %v776_v59  ;;  %v1042_v43 = vld [vmem:[#allocation7 + $0x128] sm:$0xff]  ;;  %v1049_v58 = vld [vmem:[#allocation7 + $0x160] sm:$0xff] }
 0x1b0   : > { %v755_v13 = vrot.slane %v2573_v8, 7  ;;  %v779_v14 = vrot.slane %v2573_v8, 1  ;;  %1903 = vmatprep.subr.bf16.mxu1 %v1902_v0  ;;  %v1930_v46 = vpack.c.bf16 %v1042_v43, %v1041_v42  ;;  %v1946_v63 = vpack.c.bf16 %v1050_v61, %v1049_v58 }
 0x1b1   : > { %v754_v16 = vrot.slane %v735_v10, 7  ;;  %v778_v17 = vrot.slane %v735_v10, 1  ;;  %1671 = vmatprep.mubr.f32.mxu1 %v735_v10 }
 0x1b2   : > { %1672 = vmatmul.mubr.f32.gmra.mrb[6].mxu1 %v2573_v8 }
 0x1b3   : > { %1905 = vmatpush3.bf16.msra.mxu1 %v1902_v0  ;;  %1706 = vmatprep.mubr.msk.f32.mxu1 %vm2483_vm1, %v745_v29  ;;  %v756_v20 = vsel %vm291_vm0, %v754_v16, %v755_v13  ;;  %v2591_v22 = vsel %vm316_vm2, %v778_v17, %v779_v14  ;;  %v1037_v29 = vld [vmem:[#allocation7 + $0x100] sm:$0xff]  ;;  %v1051_v0 = vld [vmem:[#allocation7 + $0x170] sm:$0xff] }
 0x1b4   : > { %1907 = vmatprep.subr.bf16.mxu1 %v1906_v15  ;;  %v1922_v33 = vpack.c.bf16 %v1038_v32, %v1037_v29 }
 0x1b7   : > { %1909 = vmatpush3.bf16.msra.mxu1 %v1906_v15 }
 0x1b8   : > { %1911 = vmatprep.subr.bf16.mxu1 %v1910_v23 }
 0x1bb   : > { %1913 = vmatpush3.bf16.msra.mxu1 %v1910_v23 }
 0x1bc   : > { %1915 = vmatprep.subr.bf16.mxu1 %v1914_v27 }
 0x1bf   : > { %1917 = vmatpush3.bf16.msra.mxu1 %v1914_v27 }
 0x1c0   : > { %1919 = vmatprep.subr.bf16.mxu1 %v1918_v31 }
 0x1c3   : > { %1921 = vmatpush3.bf16.msra.mxu1 %v1918_v31 }
 0x1c4   : > { %1923 = vmatprep.subr.bf16.mxu1 %v1922_v33 }
 0x1c6   : > { %1707 = vmatmul.mubr.f32.vlgmr.msra.gmra.mrb[0].mxu1 %v2541_v37  ;;  %v1046_v37 = vld [vmem:[#allocation7 + $0x148] sm:$0xff] }
 0x1c7   : > { %1709 = vmatprep.mubr.msk.f32.mxu1 %vm2483_vm1, %v748_v45  ;;  %1925 = vmatpush3.bf16.msra.mxu1 %v1922_v33  ;;  %v1938_v35 = vpack.c.bf16 %v1046_v37, %v1045_v53  ;;  %v1047_v45 = vld [vmem:[#allocation7 + $0x150] sm:$0xff] }
 0x1c8   : > { %1927 = vmatprep.subr.bf16.mxu1 %v1926_v41 }
 0x1ca   : > { %1710 = vmatmul.mubr.f32.gmra.mrb[2].mxu1 %v2561_v56  ;;  %v1942_v56 = vpack.c.bf16 %v1048_v54, %v1047_v45 }
 0x1cb   : > { %1712 = vmatprep.mubr.msk.f32.mxu1 %vm2483_vm1, %v751_v1  ;;  %1929 = vmatpush3.bf16.msra.mxu1 %v1926_v41  ;;  %v1052_v1 = vld [vmem:[#allocation7 + $0x178] sm:$0xff] }
 0x1cc   : > { %1931 = vmatprep.subr.bf16.mxu1 %v1930_v46  ;;  %v1950_v5 = vpack.c.bf16 %v1052_v1, %v1051_v0 }
 0x1ce   : > { %1713 = vmatmul.mubr.f32.gmra.mrb[4].mxu1 %v753_v11 }
 0x1cf   : > { %1715 = vmatprep.mubr.msk.f32.mxu1 %vm2483_vm1, %v754_v16  ;;  %1933 = vmatpush3.bf16.msra.mxu1 %v1930_v46 }
 0x1d0   : > { %1935 = vmatprep.subr.bf16.mxu1 %v1934_v50 }
 0x1d2   : > { %1716 = vmatmul.mubr.f32.gmra.mrb[6].mxu1 %v756_v20 }
 0x1d3   : > { %1937 = vmatpush3.bf16.msra.mxu1 %v1934_v50  ;;  %1750 = vmatprep.mubr.f32.mxu1 %v2546_v38 }
 0x1d4   : > { %1939 = vmatprep.subr.bf16.mxu1 %v1938_v35 }
 0x1d7   : > { %1941 = vmatpush3.bf16.msra.mxu1 %v1938_v35 }
 0x1d8   : > { %1943 = vmatprep.subr.bf16.mxu1 %v1942_v56 }
 0x1db   : > { %1945 = vmatpush3.bf16.msra.mxu1 %v1942_v56 }
 0x1dc   : > { %1947 = vmatprep.subr.bf16.mxu1 %v1946_v63 }
 0x1df   : > { %1949 = vmatpush3.bf16.msra.mxu1 %v1946_v63 }
 0x1e0   : > { %1951 = vmatprep.subr.bf16.mxu1 %v1950_v5 }
 0x1e3   : > { %1953 = vmatpush3.bf16.msra.mxu1 %v1950_v5 }
 0x1e6   : > { %1751 = vmatmul.mubr.msk.f32.vlgmr.msra.gmra.mrb[0].mxu1 %vm316_vm2, %v770_v25 }
 0x1e7   : > { %1753 = vmatprep.mubr.f32.mxu1 %v2566_v57 }
 0x1ea   : > { %1754 = vmatmul.mubr.msk.f32.gmra.mrb[2].mxu1 %vm316_vm2, %v773_v40 }
 0x1eb   : > { %1756 = vmatprep.mubr.f32.mxu1 %v2580_v12 }
 0x1ee   : > { %1757 = vmatmul.mubr.msk.f32.gmra.mrb[4].mxu1 %vm316_vm2, %v776_v59 }
 0x1ef   : > { %1759 = vmatprep.mubr.f32.mxu1 %v2591_v22 }
 0x1f2   : > { %1760 = vmatmul.mubr.msk.f32.gmra.mrb[6].mxu1 %vm316_vm2, %v779_v14 }
 0x2b9   : > { %v1752_v25 = vpop.f32.mrb[0].mxu1 }
 0x2ba   : > { %v1174_v34 = vadd.f32 %v1752_v25, %v1343_v21  ;;  %v1119_v38 = vpop.f32.mrb[1].mxu1 }
 0x2bb   : > { %v1173_v40 = vadd.f32 %v1343_v21, %v1119_v38 }
 0x2bc   : > { %v1182_v57 = vadd.f32 %v1174_v34, %v2455_v44 }
 0x2bd   : > { %v1181_v51 = vadd.f32 %v1173_v40, %v2451_v9  ;;  %v1755_v3 = vpop.f32.mrb[2].mxu1 }
 0x2be   : > { %1190 = vst [vmem:[%s272_s10 + $0x8] sm:$0xff] %v1182_v57  ;;  %v1176_v59 = vadd.f32 %v1755_v3, %v1343_v21  ;;  %v1129_v4 = vpop.f32.mrb[3].mxu1 }
 0x2bf   : > { %1189 = vst [vmem:[%s272_s10] sm:$0xff] %v1181_v51  ;;  %v1175_v6 = vadd.f32 %v1343_v21, %v1129_v4 }
 0x2c0   : > { %v1184_v7 = vadd.f32 %v1176_v59, %v2463_v52 }
 0x2c1   : > { %v1183_v8 = vadd.f32 %v1175_v6, %v2458_v47  ;;  %v1758_v10 = vpop.f32.mrb[4].mxu1 }
 0x2c2   : > { %1192 = vst [vmem:[%s272_s10 + $0x18] sm:$0xff] %v1184_v7  ;;  %v1178_v11 = vadd.f32 %v1758_v10, %v1343_v21  ;;  %v1139_v12 = vpop.f32.mrb[5].mxu1 }
 0x2c3   : > { %1191 = vst [vmem:[%s272_s10 + $0x10] sm:$0xff] %v1183_v8  ;;  %v1177_v44 = vadd.f32 %v1343_v21, %v1139_v12 }
 0x2c4   : > { %v1186_v9 = vadd.f32 %v1178_v11, %v2471_v60 }
 0x2c5   : > { %v1185_v13 = vadd.f32 %v1177_v44, %v2466_v55  ;;  %v1761_v14 = vpop.f32.mrb[6].mxu1 }
 0x2c6   : > { %1194 = vst [vmem:[%s272_s10 + $0x28] sm:$0xff] %v1186_v9  ;;  %v1180_v15 = vadd.f32 %v1761_v14, %v1343_v21  ;;  %v1149_v52 = vpop.f32.mrb[7].mxu1 }
 0x2c7   : > { %1193 = vst [vmem:[%s272_s10 + $0x20] sm:$0xff] %v1185_v13  ;;  %v1179_v47 = vadd.f32 %v1343_v21, %v1149_v52 }
 0x2c8   : > { %v1188_v16 = vadd.f32 %v1180_v15, %v2479_v2 }
 0x2c9   : > { %v1187_v55 = vadd.f32 %v1179_v47, %v2474_v62 }
 0x2ca   : > { %1196 = vst [vmem:[%s272_s10 + $0x38] sm:$0xff] %v1188_v16 }
 0x2cb   : > { %1195 = vst [vmem:[%s272_s10 + $0x30] sm:$0xff] %v1187_v55 }
 0x2cc   : > { %2156 = shalt.err (!%p2153_p1)
}
 0x2cd   : > { %s2157_s12 = scalar_lea.hbm %s2637_s11, 1024  ;;  %s2161_s15 = scalar_lea.hbm %s2687_s5, 2048 }
 0x2ce   : > { %p2158_p13 = scmp.ne.s32.totalorder %s2637_s11, %s2157_s12  ;;  %p2162_p4 = scmp.lt.u32.totalorder %s2637_s11, %s2687_s5 }
 0x2cf   : > { %p2163_p5 = scmp.lt.u32.totalorder %s2161_s15, %s2157_s12  ;;  %p2165_p11 = scmp.lt.u32.totalorder %s2157_s12, %s2637_s11 }
 0x2d0   : > { %p2159_p6 = pnand %p2158_p13, %p2703_p0 }
 0x2d1   : > { %p2164_p8 = por %p2163_p5, %p2162_p4 }
 0x2d2   : > { %p2160_p10 = pneg %p2159_p6 }
 0x2d3   : > { %p2166_p2 = por %p2165_p11, %p2164_p8 }
 0x2d5   : > { %p2167_p3 = pnand %p2166_p2, %p2160_p10 }
 0x2d7   : > { %2170 = shalt.err (!%p2167_p3)
}
 0x2d8   : > { %s2221_s13 = smov 128   ;;  %s2222_s9 = smov 8  }
 0x2d9   : > { %1996 = dma.vmem_to_hbm [thread:$0]  (%p2703_p0), %s2631_s28, 1024, %s2637_s11, %s1198_s22, %s2221_s13, %s2221_s13, %s2222_s9  }
 0x2da PF: > { %s1227_s30 = sand.u32 1, %s2201_s18   ;;  %p2704_p7 = scmp.ne.s32.totalorder %s2692_s25, 0 }
 0x2db   : > { %p2705_p9 = scmp.ge.s32.totalorder %s2213_s21, 2  ;;  %s1228_s17 = scalar_lea.sflag [#allocation4], %s1227_s30 }
 0x2dd   : > { %p2010_p12 = pnand %p2705_p9, %p2704_p7 }
 0x2df   : > { %2196 = dma.done.wait (!%p2010_p12), %s1228_s17, 1024  }
 0x2e0   : > { %2198 = vsyncadd (!%p2010_p12), %s1228_s17, 4294966272  ;;  %p19_p1 = scmp.ge.s32.totalorder %s2369_s29, 4   ;;  %s2706_s18 = smov %s2205_s19 }
 0x2e1   : > { %s2707_s19 = smov %s2209_s20  ;;  %s2708_s20 = smov %s2385_s27 }
 0x2e2   : > { %s2709_s21 = smov %s2369_s29  ;;  %21 = sbr.rel (!%p19_p1) target bundleno = 6 (0x6), region = 97 }
 0x2e9   :  { %1233 = vsyncpa [#allocation3], 1 }
 0x2ea   :  { %1235 = vsyncpa [#allocation3 + $0x1], 1 }
 0x2eb   :  { %1236 = vsyncpa [#allocation6], 1 }
 0x2ec   :  { %1237 = vsyncpa [#allocation4], 1 }
 0x2ed   :  { %1239 = vsyncpa [#allocation4 + $0x1], 1 }

</bundles_post_ra>
